<compile_context>
chip_gen: v6e
topology: v6e:2x2x1
jax: 0.10.0
libtpu: 0.0.40
codegen_flags: <defaults>
</compile_context>

<pallas_src>
import functools

import jax
import jax.numpy as jnp
from jax import lax
from jax.experimental import pallas as pl
from jax.experimental.pallas import tpu as pltpu

GAMMA = 2.0
ALPHA = 0.25


def _focal_loss_kernel(x_ref, t_ref, out_ref, acc_ref, *,
                       gamma, alpha0, alpha1, hw, tile_hw, need_mask):
    j = pl.program_id(1)                       # H*W tile index (reduction axis)

    x = x_ref[0].astype(jnp.float32)           # (C, tile_hw)  classes on sublanes
    t = t_ref[0]                               # (1, tile_hw)  int32 targets

    # Row-wise (over C) numerically-stable log-softmax, reduced along sublanes.
    m = jnp.max(x, axis=0, keepdims=True)      # (1, tile_hw)
    z = x - m
    lse = jnp.log(jnp.sum(jnp.exp(z), axis=0, keepdims=True))

    # Gather z at the target class via a one-hot compare (VPU friendly).
    cls = lax.broadcasted_iota(jnp.int32, x.shape, 0)          # (C, tile_hw)
    z_t = jnp.sum(jnp.where(cls == t, z, 0.0), axis=0, keepdims=True)
    logpt = z_t - lse                                          # (1, tile_hw)

    pt = jnp.exp(logpt)
    at = jnp.where(t != 0, jnp.float32(alpha1), jnp.float32(alpha0))

    omp = 1.0 - pt
    if gamma == 2.0:                       # static: integer power -> plain VPU muls
        mod = omp * omp
    elif float(gamma).is_integer() and gamma >= 0:
        mod = jnp.ones_like(omp)
        for _ in range(int(gamma)):
            mod = mod * omp
    else:
        mod = omp ** gamma                 # non-integer gamma: keep pow
    loss = -mod * (logpt * at)             # (1, tile_hw)

    if need_mask:
        # Ragged last tile: zero out lanes past the true H*W extent.
        col = j * tile_hw + lax.broadcasted_iota(jnp.int32, loss.shape, 1)
        loss = jnp.where(col < hw, loss, 0.0)

    @pl.when(j == 0)
    def _():
        acc_ref[...] = jnp.zeros_like(acc_ref)

    acc_ref[...] += loss                   # per-lane partials; no per-step reduce

    @pl.when(j == pl.num_programs(1) - 1)
    def _():
        partial = jnp.sum(acc_ref[...])    # single cross-lane reduce per batch n
        out_ref[...] = jnp.broadcast_to(partial, out_ref.shape).astype(jnp.float32)


def focal_loss(logits_nchw, target_nhw, *, gamma=GAMMA, alpha=ALPHA,
               size_average=True, block_bytes=2 << 20):
    """logits_nchw: (N, C, H, W) float; target_nhw: (N, H, W) int."""
    N, C, H, W = logits_nchw.shape
    HW = H * W
    alpha0 = float(alpha)
    alpha1 = 1.0 - float(alpha)

    # Free (contiguous) reshapes — no transpose, no pad, no extra HBM pass.
    x = logits_nchw.reshape(N, C, HW)
    t = target_nhw.reshape(N, 1, HW).astype(jnp.int32)

    itemsize = jnp.dtype(logits_nchw.dtype).itemsize
    tile_hw = max(128, (block_bytes // (C * itemsize)) // 128 * 128)
    if HW <= tile_hw:
        tile_hw = HW                       # block == full extent (always legal)
        n_hw_tiles = 1
        need_mask = False
    else:
        n_hw_tiles = pl.cdiv(HW, tile_hw)
        need_mask = (HW % tile_hw) != 0

    kernel = functools.partial(
        _focal_loss_kernel,
        gamma=float(gamma), alpha0=alpha0, alpha1=alpha1,
        hw=HW, tile_hw=tile_hw, need_mask=need_mask)

    partials = pl.pallas_call(
        kernel,
        out_shape=jax.ShapeDtypeStruct((N, 1, 128), jnp.float32),
        grid_spec=pltpu.PrefetchScalarGridSpec(
            num_scalar_prefetch=0,
            grid=(N, n_hw_tiles),
            in_specs=[
                pl.BlockSpec((1, C, tile_hw), lambda n, j: (n, 0, j)),
                pl.BlockSpec((1, 1, tile_hw), lambda n, j: (n, 0, j)),
            ],
            out_specs=pl.BlockSpec((1, 1, 128), lambda n, j: (n, 0, 0)),
            scratch_shapes=[pltpu.VMEM((1, tile_hw), jnp.float32)],
        ),
        compiler_params=pltpu.CompilerParams(
            dimension_semantics=("parallel", "arbitrary")),
    )(x, t)

    total = jnp.sum(partials[:, 0, 0])
    if size_average:
        return total / jnp.float32(N * HW)
    return total


def _focal_loss_ref(logits_nchw, target_nhw, gamma=GAMMA, alpha=ALPHA,
                    size_average=True):
    N, C, H, W = logits_nchw.shape
    x = jnp.transpose(logits_nchw.reshape(N, C, H * W), (0, 2, 1)).reshape(-1, C)
    t = target_nhw.reshape(-1).astype(jnp.int32)
    logp = jax.nn.log_softmax(x, axis=1)
    logpt = jnp.take_along_axis(logp, t[:, None], axis=1)[:, 0]
    pt = jnp.exp(logpt)
    at = jnp.where(t != 0, 1.0 - alpha, alpha)
    loss = -((1.0 - pt) ** gamma) * (logpt * at)
    return loss.mean() if size_average else loss.sum()


if __name__ == "__main__":
    key = jax.random.PRNGKey(0)
    k1, k2 = jax.random.split(key)
    N, C, H, W = 2, 4, 16, 16
    logits = jax.random.normal(k1, (N, C, H, W), dtype=jnp.float32)
    target = jax.random.randint(k2, (N, H, W), 0, C, dtype=jnp.int32)

    loss = focal_loss(logits, target)
    jax.block_until_ready(loss)

    ref = _focal_loss_ref(logits, target)
    assert jnp.allclose(loss, ref, rtol=1e-5, atol=1e-6), (loss, ref)
    print("KERNEL_OK")
</pallas_src>

<mosaic_0001>
module attributes {stable_mosaic.version = 11 : i64} {
  func.func @_focal_loss_kernel(%arg0: i32, %arg1: i32, %arg2: memref<1x4x256xf32, #tpu.memory_space<vmem>>, %arg3: memref<1x1x256xi32, #tpu.memory_space<vmem>>, %arg4: memref<1x1x128xf32, #tpu.memory_space<vmem>>, %arg5: memref<1x256xf32, #tpu.memory_space<vmem>>) attributes {dimension_semantics = [#tpu.dimension_semantics<parallel>, #tpu.dimension_semantics<arbitrary>], iteration_bounds = array<i64: 2, 1>, scalar_prefetch = 0 : i64, scratch_operands = 1 : i64, tpu.core_type = #tpu.core_type<tc>, window_params = [{transform_indices = @transform_0, window_bounds = array<i64: 1, 4, 256>}, {transform_indices = @transform_1, window_bounds = array<i64: 1, 1, 256>}, {transform_indices = @transform_2, window_bounds = array<i64: 1, 1, 128>}]} {
    %c0 = arith.constant 0 : index
    %c0_0 = arith.constant 0 : index
    %c0_1 = arith.constant 0 : index
    %0 = vector.load %arg2[%c0, %c0_0, %c0_1] : memref<1x4x256xf32, #tpu.memory_space<vmem>>, vector<1x4x256xf32>
    %1 = vector.shape_cast %0 : vector<1x4x256xf32> to vector<4x256xf32>
    %c0_2 = arith.constant 0 : index
    %c0_3 = arith.constant 0 : index
    %c0_4 = arith.constant 0 : index
    %2 = vector.load %arg3[%c0_2, %c0_3, %c0_4] : memref<1x1x256xi32, #tpu.memory_space<vmem>>, vector<1x1x256xi32>
    %3 = vector.shape_cast %2 : vector<1x1x256xi32> to vector<1x256xi32>
    %cst = arith.constant dense<0xFF800000> : vector<256xf32>
    %4 = vector.multi_reduction <maximumf>, %1, %cst [0] : vector<4x256xf32> to vector<256xf32>
    %5 = vector.shape_cast %4 : vector<256xf32> to vector<1x256xf32>
    %6 = vector.broadcast %5 : vector<1x256xf32> to vector<4x256xf32>
    %7 = arith.subf %1, %6 : vector<4x256xf32>
    %8 = math.exp %7 : vector<4x256xf32>
    %cst_5 = arith.constant dense<0.000000e+00> : vector<256xf32>
    %9 = vector.multi_reduction <add>, %8, %cst_5 [0] : vector<4x256xf32> to vector<256xf32>
    %10 = vector.shape_cast %9 : vector<256xf32> to vector<1x256xf32>
    %11 = math.log %10 : vector<1x256xf32>
    %12 = tpu.iota {dimensions = array<i32: 0>} : vector<4x256xi32>
    %13 = vector.broadcast %3 : vector<1x256xi32> to vector<4x256xi32>
    %14 = arith.cmpi eq, %12, %13 : vector<4x256xi32>
    %cst_6 = arith.constant 0.000000e+00 : f32
    %15 = vector.broadcast %cst_6 : f32 to vector<4x256xf32>
    %16 = arith.select %14, %7, %15 : vector<4x256xi1>, vector<4x256xf32>
    %cst_7 = arith.constant dense<0.000000e+00> : vector<256xf32>
    %17 = vector.multi_reduction <add>, %16, %cst_7 [0] : vector<4x256xf32> to vector<256xf32>
    %18 = vector.shape_cast %17 : vector<256xf32> to vector<1x256xf32>
    %19 = arith.subf %18, %11 : vector<1x256xf32>
    %20 = math.exp %19 : vector<1x256xf32>
    %c0_i32 = arith.constant 0 : i32
    %21 = vector.broadcast %c0_i32 : i32 to vector<1x256xi32>
    %22 = arith.cmpi ne, %3, %21 : vector<1x256xi32>
    %cst_8 = arith.constant 7.500000e-01 : f32
    %cst_9 = arith.constant 2.500000e-01 : f32
    %23 = vector.broadcast %cst_8 : f32 to vector<1x256xf32>
    %24 = vector.broadcast %cst_9 : f32 to vector<1x256xf32>
    %25 = arith.select %22, %23, %24 : vector<1x256xi1>, vector<1x256xf32>
    %cst_10 = arith.constant 1.000000e+00 : f32
    %26 = vector.broadcast %cst_10 : f32 to vector<1x256xf32>
    %27 = arith.subf %26, %20 : vector<1x256xf32>
    %28 = arith.mulf %27, %27 : vector<1x256xf32>
    %cst_11 = arith.constant 0.000000e+00 : f32
    %29 = vector.broadcast %cst_11 : f32 to vector<1x256xf32>
    %30 = arith.subf %29, %28 : vector<1x256xf32>
    %31 = arith.mulf %19, %25 : vector<1x256xf32>
    %32 = arith.mulf %30, %31 : vector<1x256xf32>
    %c0_i32_12 = arith.constant 0 : i32
    %33 = arith.cmpi eq, %arg1, %c0_i32_12 : i32
    %34 = arith.extui %33 : i1 to i32
    %c0_i32_13 = arith.constant 0 : i32
    %35 = arith.cmpi ne, %34, %c0_i32_13 : i32
    scf.if %35 {
      %cst_20 = arith.constant 0.000000e+00 : f32
      %42 = vector.broadcast %cst_20 : f32 to vector<1x256xf32>
      %c0_21 = arith.constant 0 : index
      %c0_22 = arith.constant 0 : index
      %43 = vector.load %arg5[%c0_21, %c0_22] : memref<1x256xf32, #tpu.memory_space<vmem>>, vector<1x256xf32>
      tpu.vector_store %arg5[%c0_21, %c0_22], %42 {strides = array<i32>} : memref<1x256xf32, #tpu.memory_space<vmem>>, vector<1x256xf32>,
    } else {
    }
    %c0_14 = arith.constant 0 : index
    %c0_15 = arith.constant 0 : index
    %36 = vector.load %arg5[%c0_14, %c0_15] : memref<1x256xf32, #tpu.memory_space<vmem>>, vector<1x256xf32>
    %37 = arith.addf %36, %32 : vector<1x256xf32>
    %c0_16 = arith.constant 0 : index
    %c0_17 = arith.constant 0 : index
    %38 = vector.load %arg5[%c0_16, %c0_17] : memref<1x256xf32, #tpu.memory_space<vmem>>, vector<1x256xf32>
    tpu.vector_store %arg5[%c0_16, %c0_17], %37 {strides = array<i32>} : memref<1x256xf32, #tpu.memory_space<vmem>>, vector<1x256xf32>,
    %c0_i32_18 = arith.constant 0 : i32
    %39 = arith.cmpi eq, %arg1, %c0_i32_18 : i32
    %40 = arith.extui %39 : i1 to i32
    %c0_i32_19 = arith.constant 0 : i32
    %41 = arith.cmpi ne, %40, %c0_i32_19 : i32
    scf.if %41 {
      %c0_20 = arith.constant 0 : index
      %c0_21 = arith.constant 0 : index
      %42 = vector.load %arg5[%c0_20, %c0_21] : memref<1x256xf32, #tpu.memory_space<vmem>>, vector<1x256xf32>
      %43 = vector.shape_cast %42 : vector<1x256xf32> to vector<1x1x256xf32>
      %cst_22 = arith.constant dense<0.000000e+00> : vector<1xf32>
      %44 = vector.multi_reduction <add>, %43, %cst_22 [1, 2] : vector<1x1x256xf32> to vector<1xf32>
      %45 = vector.shape_cast %44 : vector<1xf32> to vector<1x1x1xf32>
      %46 = vector.extract %45[0, 0, 0] : f32 from vector<1x1x1xf32>
      %47 = vector.broadcast %46 : f32 to vector<1x1x128xf32>
      %c0_23 = arith.constant 0 : index
      %c0_24 = arith.constant 0 : index
      %c0_25 = arith.constant 0 : index
      %48 = vector.load %arg4[%c0_23, %c0_24, %c0_25] : memref<1x1x128xf32, #tpu.memory_space<vmem>>, vector<1x1x128xf32>
      tpu.vector_store %arg4[%c0_23, %c0_24, %c0_25], %47 {strides = array<i32>} : memref<1x1x128xf32, #tpu.memory_space<vmem>>, vector<1x1x128xf32>,
    } else {
    }
    return
  }
  func.func @transform_0(%arg0: i32, %arg1: i32) -> (i32, i32, i32) {
    %c0_i32 = arith.constant 0 : i32
    %c0_i32_0 = arith.constant 0 : i32
    return %arg0, %c0_i32, %arg1 : i32, i32, i32
  }
  func.func @transform_1(%arg0: i32, %arg1: i32) -> (i32, i32, i32) {
    %c0_i32 = arith.constant 0 : i32
    %c0_i32_0 = arith.constant 0 : i32
    return %arg0, %c0_i32, %arg1 : i32, i32, i32
  }
  func.func @transform_2(%arg0: i32, %arg1: i32) -> (i32, i32, i32) {
    %c0_i32 = arith.constant 0 : i32
    %c0_i32_0 = arith.constant 0 : i32
    %c0_i32_1 = arith.constant 0 : i32
    return %arg0, %c0_i32, %c0_i32_0 : i32, i32, i32
  }
}

</mosaic_0001>

<bundles_post_ra>
// kernel: tpu_custom_call.1
= control target key start
LH: loop header
LB: loop body
LE: loop exit
PB: predicated region body
PF: predicated region fallthrough
CT: control target
= control target key end

     0   :  { %7 = vsyncpa [#allocation4], 0  ;;  %s973_s0 = inlined_call_operand.hbm [shape: f32[2,4,256], index: 0, kind: input, shape index: {}]   ;;  %s974_s1 = inlined_call_operand.hbm [shape: s32[2,1,256], index: 1, kind: input, shape index: {}]   ;;  %s975_s2 = inlined_call_operand.hbm [shape: f32[2,1,128], index: 2, kind: output, shape index: {}]  }
   0x1   :  { %9 = vsyncpa [#allocation4 + $0x1], 0 }
   0x2   :  { %10 = vsyncpa [#allocation7], 0 }
   0x3   :  { %12 = vsyncpa [#allocation7 + $0x1], 0 }
   0x4   :  { %13 = vsyncpa [#allocation5], 0 }
   0x5   :  { %15 = vsyncpa [#allocation5 + $0x1], 0  ;;  %s771_s9 = smov 0   ;;  %s773_s10 = smov 0  }
   0x6   :  { %s775_s11 = smov 0   ;;  %s777_s12 = smov 0  }
   0x7   :  { %s779_s13 = smov 0   ;;  %s781_s14 = smov 0  }
   0x8 LB: > { %s507_s15 = sadd.s32 4294967295, %s748_s14   ;;  %s508_s16 = sadd.s32 4294967294, %s748_s14   ;;  %s748_s14 = sphi %s781_s14, %s21_s14   ;;  %s744_s13 = sphi %s779_s13, %s989_s13   ;;  %s740_s12 = sphi %s777_s12, %s988_s12   ;;  %s736_s11 = sphi %s775_s11, %s987_s11   ;;  %s732_s10 = sphi %s773_s10, %s986_s10   ;;  %s728_s9 = sphi %s771_s9, %s985_s9  }
   0x9   : > { %s33_s17 = sadd.s32 1, %s744_s13  ;;  %s42_s18 = sadd.s32 1, %s736_s11 }
   0xa   : > { %p35_p0 = scmp.ge.s32.totalorder %s33_s17, 2  ;;  %p49_p1 = scmp.ne.s32.totalorder %s736_s11, %s732_s10 }
   0xb   : > { %p50_p2 = scmp.eq.s32.totalorder %s748_s14, 0  ;;  %p55_p3 = scmp.ne.s32.totalorder %s732_s10, %s728_s9 }
   0xc   : > { %s991_s17 = smov (%p35_p0, %s33_s17), 0  ;;  %p56_p5 = scmp.eq.s32.totalorder %s507_s15, 0 }
   0xd   : > { %p812_p4 = por %p50_p2, %p49_p1  ;;  %s37_s20 = ssub.s32 %s744_s13, %s991_s17 }
   0xe   : > { %p107_p6 = scmp.eq.s32.totalorder %s507_s15, 1  ;;  %p40_p7 = scmp.eq.s32.totalorder %s37_s20, 0 }
   0xf   : > { %p818_p8 = por %p56_p5, %p55_p3  ;;  %p113_p10 = scmp.eq.s32.totalorder %s508_s16, 1 }
  0x10   : > { %p822_p9 = por %p107_p6, %p49_p1  ;;  %p544_p13 = scmp.lt.s32.totalorder %s748_s14, 2 }
  0x11   : > { %s827_s23 = scalar_select %p40_p7, %s736_s11, %s42_s18  }
  0x12   : > { %p829_p11 = por %p113_p10, %p55_p3  ;;  %s836_s25 = sand.u32 1, %s736_s11  }
  0x13   : > { %s511_s26 = sshll.u32 %s836_s25, 3  ;;  %s523_s27 = sshll.u32 %s744_s13, 7 }
  0x14   : > { %s145_s30 = scalar_lea.hbm %s973_s0, %s523_s27  ;;  %s137_s3 = scalar_lea.vmem [#allocation3], %s511_s26 }
  0x15   : > { %s147_s4 = sshll.u32 %s137_s3, 4  ;;  %p845_p0 = pnand %p544_p13, %p812_p4  ;;  %s148_s4 = int_to_ptr.vmem [resolvable:$true] %s147_s4 }
  0x16   : > { %p517_p1 = scmp.ge.s32.totalorder %s748_s14, 1  ;;  %p173_p2 = scmp.lt.s32.totalorder %s748_s14, 3 }
  0x17   : > { %s134_s6 = scalar_lea.sflag [#allocation4], %s836_s25  ;;  %p610_p3 = pneg %p845_p0 }
  0x18   : > { %s621_s7 = scalar_lea.vmem %s148_s4, 128  ;;  %s750_s8 = smov [#allocation3]  }
  0x19   : > { %p622_p5 = scmp.ne.s32.totalorder %s148_s4, %s621_s7  ;;  %s626_s15 = sshll.u32 %s750_s8, 4  ;;  %s627_s15 = int_to_ptr.vmem [resolvable:$false] %s626_s15 }
  0x1a   : > { %s628_s16 = scalar_lea.vmem %s627_s15, 256  ;;  %p629_p4 = scmp.lt.s32.totalorder %s148_s4, %s627_s15 }
  0x1b   : > { %p624_p6 = pnand %p622_p5, %p610_p3  ;;  %p630_p10 = scmp.lt.s32.totalorder %s628_s16, %s621_s7 }
  0x1d   : > { %p625_p7 = pneg %p624_p6  ;;  %p631_p13 = por %p630_p10, %p629_p4 }
  0x1f   : > { %p632_p12 = pnand %p631_p13, %p625_p7 }
  0x21   : > { %635 = shalt.err (!%p632_p12)
}
  0x22   : > { %536 = dma.hbm_to_vmem [thread:$0]  (!%p845_p0), %s145_s30, 128, %s148_s4, %s134_s6  }
  0x23   : > { %p863_p5 = pnand %p517_p1, %p173_p2  ;;  %s514_s19 = sshll.u32 %s836_s25, 1 }
  0x24   : > { %s524_s20 = sshll.u32 %s744_s13, 5  ;;  %s158_s29 = scalar_lea.vmem [#allocation6], %s514_s19 }
  0x25   : > { %s166_s28 = scalar_lea.hbm %s974_s1, %s524_s20  ;;  %s168_s3 = sshll.u32 %s158_s29, 4  ;;  %s169_s3 = int_to_ptr.vmem [resolvable:$true] %s168_s3 }
  0x26   : > { %s155_s7 = scalar_lea.sflag [#allocation7], %s836_s25  ;;  %s649_s8 = scalar_lea.vmem %s169_s3, 32 }
  0x27   : > { %p650_p12 = scmp.ne.s32.totalorder %s169_s3, %s649_s8  ;;  %s751_s30 = smov [#allocation6]  }
  0x28   : > { %s654_s4 = sshll.u32 %s751_s30, 4  ;;  %s655_s4 = int_to_ptr.vmem [resolvable:$false] %s654_s4 }
  0x29   : > { %p652_p6 = pnand %p650_p12, %p610_p3  ;;  %s656_s6 = scalar_lea.vmem %s655_s4, 64 }
  0x2a   : > { %p657_p1 = scmp.lt.s32.totalorder %s169_s3, %s655_s4  ;;  %p658_p2 = scmp.lt.s32.totalorder %s656_s6, %s649_s8 }
  0x2b   : > { %p653_p7 = pneg %p652_p6 }
  0x2c   : > { %p659_p4 = por %p658_p2, %p657_p1 }
  0x2e   : > { %p660_p10 = pnand %p659_p4, %p653_p7 }
  0x30   : > { %663 = shalt.err (!%p660_p10)
}
  0x31   : > { %539 = dma.hbm_to_vmem [thread:$0]  (!%p845_p0), %s166_s28, 32, %s169_s3, %s155_s7  }
  0x32   : > { %177 = sbr.rel (%p863_p5) target bundleno = 387 (0x183), region = 28  ;;  %s881_s25 = sand.u32 (!%p863_p5), 1, %s732_s10  }
  0x33   : > { %s518_s15 = sshll.u32 (!%p863_p5), %s881_s25, 3  ;;  %s180_s16 = scalar_lea.sflag (!%p863_p5), [#allocation4], %s881_s25 }
  0x34   : > { %s183_s19 = scalar_lea.vmem (!%p863_p5), [#allocation3], %s518_s15 }
  0x37   : > { %715 = dma.done.wait (%p818_p8), %s180_s16, 128  }
  0x38   : > { %717 = vsyncadd (%p818_p8), %s180_s16, 4294967168  ;;  %s519_s5 = sshll.u32 %s881_s25, 1  ;;  %s189_s18 = scalar_lea.sflag [#allocation7], %s881_s25 }
  0x39   : > { %s192_s20 = scalar_lea.vmem [#allocation6], %s519_s5 }
  0x3a   : > { %719 = dma.done.wait (%p818_p8), %s189_s18, 32  }
  0x3b   : > { %721 = vsyncadd (%p818_p8), %s189_s18, 4294967264  ;;  %v267_v0 = vlaneseq  ;;  %v752_v2 = vmov 0.0   ;;  %vm224_vm1 = vcmask 1043456   ;;  %v219_v3 = vld [vmem:[%s183_s19] sm:$0xff]  ;;  %v220_v24 = vld [vmem:[%s192_s20] sm:$0x3] }
  0x3c   : > { %v222_v4 = vcombine.high %v219_v3, %v219_v3  ;;  %v225_v5 = vsel %vm224_vm1, %v219_v3, -inf  ;;  %vm304_vm4 = vcmp.ne.s32.totalorder %v220_v24, 0  ;;  %vm376_vm5 = vcmask 1040384   ;;  %s216_s21 = scalar_lea.vmem [#allocation8], %s881_s25  ;;  %s520_s27 = sshll.u32 %s740_s12, 4 }
  0x3d   : > { %vm895_vm0 = vcmp.lt.s32.totalorder %v267_v0, 256  ;;  %v226_v6 = vrot.slane %v225_v5, 4  ;;  %v903_v22 = vshrl.u32 %v267_v0, 7  ;;  %s404_s26 = sshll.u32 %s216_s21, 4  ;;  %s402_s7 = scalar_lea.hbm %s975_s2, %s520_s27  ;;  %s928_s26 = int_to_ptr.vmem [resolvable:$true] %s404_s26 }
  0x3e   : > { %335 = vst.msk [vmem:[#allocation2] sm:$0x3] %vm895_vm0, %v752_v2  ;;  %v232_v7 = vsel %vm224_vm1, %v222_v4, -inf  ;;  %s392_s8 = scalar_lea.sflag [#allocation5], %s881_s25  ;;  %s664_s30 = scalar_lea.vmem %s928_s26, 16 }
  0x3f   : > { %v227_v8 = vmax.f32 %v225_v5, %v226_v6  ;;  %v233_v9 = vrot.slane %v232_v7, 4  ;;  %v906_v23 = vsub.s32 0, %v903_v22  ;;  %v909_v25 = vsub.s32 1, %v903_v22  ;;  %p665_p8 = scmp.ne.s32.totalorder %s928_s26, %s664_s30  ;;  %s755_s4 = smov [#allocation8]  }
  0x40   : > { %v753_v6 = vmov 0.25   ;;  %s668_s12 = sshll.u32 %s755_s4, 4  ;;  %s669_s12 = int_to_ptr.vmem [resolvable:$false] %s668_s12 }
  0x41   : > { %v228_v10 = vrot.slane %v227_v8, 2  ;;  %v234_v11 = vmax.f32 %v232_v7, %v233_v9  ;;  %v272_v26 = vrot.slane %v220_v24, %v906_v23  ;;  %v276_v27 = vrot.slane %v220_v24, %v909_v25  ;;  %p666_p0 = pnand %p665_p8, %p822_p9  ;;  %s670_s6 = scalar_lea.vmem %s669_s12, 32 }
  0x42   : > { %v305_v7 = vsel %vm304_vm4, 0.75, %v753_v6  ;;  %p671_p13 = scmp.lt.s32.totalorder %s928_s26, %s669_s12  ;;  %p672_p5 = scmp.lt.s32.totalorder %s670_s6, %s664_s30 }
  0x43   : > { %v229_v12 = vmax.f32 %v227_v8, %v228_v10  ;;  %v235_v13 = vrot.slane %v234_v11, 2  ;;  %vm277_vm2 = vcmp.eq.s32.totalorder %v903_v22, %v272_v26  ;;  %vm278_vm3 = vcmp.eq.s32.totalorder %v903_v22, %v276_v27  ;;  %p667_p3 = pneg %p666_p0 }
  0x44   : > { %v316_v8 = vrot.slane %v305_v7, %v906_v23  ;;  %p673_p12 = por %p672_p5, %p671_p13 }
  0x45   : > { %v230_v14 = vrot.slane %v229_v12, 1  ;;  %v236_v15 = vmax.f32 %v234_v11, %v235_v13  ;;  %v320_v11 = vrot.slane %v305_v7, %v909_v25 }
  0x46   : > { %p674_p6 = pnand %p673_p12, %p667_p3 }
  0x47   : > { %v231_v16 = vmax.f32 %v229_v12, %v230_v14  ;;  %v237_v17 = vrot.slane %v236_v15, 1  ;;  %v754_v12 = vmov 1966171168  }
  0x48   : > { %v341_v13 = vunpack.c.l.s4 %v754_v12 }
  0x49   : > { %v238_v18 = vmax.f32 %v236_v15, %v237_v17 }
  0x4b   : > { %v241_v19 = vcombine.low %v231_v16, %v238_v18 }
  0x4d   : > { %v243_v20 = vsub.f32 %v219_v3, %v241_v19 }
  0x4f   : > { %v244_v21 = vmul.f32 1.442695, %v243_v20  ;;  %v280_v28 = vcombine.high %v243_v20, %v243_v20  ;;  %v282_v30 = vsel %vm277_vm2, %v243_v20, 0.0 }
  0x50   : > { %v284_v36 = vsel %vm224_vm1, %v282_v30, 0.0 }
  0x51   : > { %598 = vpow2.f32 %v244_v21  ;;  %v283_v34 = vsel %vm278_vm3, %v280_v28, 0.0  ;;  %v285_v42 = vrot.slane %v284_v36, 4  ;;  %v342_v21 = vunpack.c.0.s8 %v341_v13 }
  0x52   : > { %v291_v39 = vsel %vm224_vm1, %v283_v34, 0.0 }
  0x53   : > { %v292_v45 = vrot.slane %v291_v39, 4  ;;  %v286_v48 = vadd.f32 %v285_v42, %v284_v36  ;;  %v345_v28 = vsub.s32 %v342_v21, %v903_v22 }
  0x55   : > { %v293_v51 = vadd.f32 %v292_v45, %v291_v39  ;;  %v287_v53 = vrot.slane %v286_v48, 2 }
  0x57   : > { %v294_v54 = vrot.slane %v293_v51, 2  ;;  %v288_v55 = vadd.f32 %v287_v53, %v286_v48 }
  0x59   : > { %v295_v56 = vadd.f32 %v294_v54, %v293_v51  ;;  %v289_v57 = vrot.slane %v288_v55, 1 }
  0x5b   : > { %v296_v58 = vrot.slane %v295_v56, 1  ;;  %v290_v59 = vadd.f32 %v289_v57, %v288_v55 }
  0x5d   : > { %v297_v62 = vadd.f32 %v296_v58, %v295_v56 }
  0x5e   : > { %v599_v29 = vpop.eup %598 }
  0x5f   : > { %v247_v31 = vcombine.high %v599_v29, %v599_v29  ;;  %v249_v32 = vsel %vm224_vm1, %v599_v29, 0.0 }
  0x60   : > { %v250_v33 = vrot.slane %v249_v32, 4 }
  0x61   : > { %v256_v35 = vsel %vm224_vm1, %v247_v31, 0.0  ;;  %v336_v31 = vld [vmem:[#allocation2] sm:$0x3] }
  0x62   : > { %v251_v37 = vadd.f32 %v250_v33, %v249_v32  ;;  %v257_v38 = vrot.slane %v256_v35, 4 }
  0x64   : > { %v252_v40 = vrot.slane %v251_v37, 2  ;;  %v258_v41 = vadd.f32 %v257_v38, %v256_v35 }
  0x66   : > { %v253_v43 = vadd.f32 %v252_v40, %v251_v37  ;;  %v259_v44 = vrot.slane %v258_v41, 2 }
  0x68   : > { %v254_v46 = vrot.slane %v253_v43, 1  ;;  %v260_v47 = vadd.f32 %v259_v44, %v258_v41 }
  0x6a   : > { %v255_v49 = vadd.f32 %v254_v46, %v253_v43  ;;  %v261_v50 = vrot.slane %v260_v47, 1 }
  0x6c   : > { %v262_v52 = vadd.f32 %v261_v50, %v260_v47  ;;  %600 = vlog2.f32 %v255_v49 }
  0x6e   : > { %602 = vlog2.f32 %v262_v52 }
  0x79   : > { %v601_v60 = vpop.eup %600 }
  0x7a   : > { %v264_v61 = vmul.f32 0.6931472, %v601_v60 }
  0x7b   : > { %v603_v63 = vpop.eup %602 }
  0x7c   : > { %v266_v0 = vmul.f32 0.6931472, %v603_v63  ;;  %v298_v2 = vsub.f32 %v290_v59, %v264_v61 }
  0x7e   : > { %v299_v3 = vsub.f32 %v297_v62, %v266_v0  ;;  %v300_v4 = vmul.f32 1.442695, %v298_v2  ;;  %v323_v17 = vmul.f32 %v316_v8, %v298_v2 }
  0x80   : > { %604 = vpow2.f32 %v300_v4  ;;  %v302_v5 = vmul.f32 1.442695, %v299_v3  ;;  %v324_v20 = vmul.f32 %v320_v11, %v299_v3 }
  0x82   : > { %606 = vpow2.f32 %v302_v5 }
  0x8d   : > { %v605_v9 = vpop.eup %604 }
  0x8e   : > { %v306_v10 = vsub.f32 1.0, %v605_v9 }
  0x8f   : > { %v607_v14 = vpop.eup %606 }
  0x90   : > { %v307_v15 = vsub.f32 1.0, %v607_v14  ;;  %v308_v16 = vmul.f32 %v306_v10, %v306_v10 }
  0x92   : > { %v309_v18 = vmul.f32 %v307_v15, %v307_v15  ;;  %v310_v19 = vsub.f32 0.0, %v308_v16 }
  0x94   : > { %v311_v26 = vsub.f32 0.0, %v309_v18  ;;  %v325_v24 = vmul.f32 %v323_v17, %v310_v19 }
  0x96   : > { %v326_v27 = vmul.f32 %v324_v20, %v311_v26 }
  0x98   : > { %v339_v29 = vcombine.low %v325_v24, %v326_v27 }
  0x9a   : > { %v346_v30 = vrot.slane %v339_v29, %v345_v28 }
  0x9c   : > { %v353_v32 = vrot.slane %v346_v30, %v345_v28 }
  0x9e   : > { %v355_v33 = vadd.f32 %v353_v32, %v336_v31 }
  0xa0   : > { %360 = vst.msk [vmem:[#allocation2] sm:$0x3] %vm895_vm0, %v355_v33 }
  0xa7   : > { %v364_v34 = vld [vmem:[#allocation2] sm:$0x3] }
  0xa8   : > { %v369_v35 = vrot.slane %v364_v34, %v906_v23  ;;  %v373_v36 = vrot.slane %v364_v34, %v909_v25 }
  0xaa   : > { %v377_v37 = vsel %vm376_vm5, %v369_v35, 0.0  ;;  %v378_v38 = vsel %vm376_vm5, %v373_v36, 0.0 }
  0xab   : > { %v379_v39 = vadd.f32 %v378_v38, %v377_v37 }
  0xad   : > { %380 = vadd.xlane.f32.xlu0 %v379_v39 }
 0x136   : > { %v381_v22 = vpop.xlane.xlu0 %380 }
 0x137   : > { %v382_v40 = vrot.slane %v381_v22, 4 }
 0x139   : > { %v383_v41 = vadd.f32 %v382_v40, %v381_v22 }
 0x13b   : > { %v384_v42 = vrot.slane %v383_v41, 2 }
 0x13d   : > { %v385_v1 = vadd.f32 %v384_v42, %v383_v41 }
 0x13f   : > { %v386_v43 = vrot.slane %v385_v1, 1 }
 0x141   : > { %v387_v44 = vadd.f32 %v386_v43, %v385_v1 }
 0x143   : > { %525 = vpush %v387_v44 }
 0x174   : > { %s526_s28 = spop %525 }
 0x175   : > { %v389_v23 = vstv %s526_s28 }
 0x176   : > { %390 = vst [vmem:[%s216_s21] sm:$0x1] %v389_v23 }
 0x177   : > { %677 = shalt.err (!%p674_p6)
}
 0x178   : > { %s678_s15 = scalar_lea.hbm %s402_s7, 16  ;;  %s682_s19 = scalar_lea.hbm %s975_s2, 32 }
 0x179   : > { %p679_p7 = scmp.ne.s32.totalorder %s402_s7, %s678_s15  ;;  %p683_p4 = scmp.lt.s32.totalorder %s402_s7, %s975_s2 }
 0x17a   : > { %p684_p10 = scmp.lt.s32.totalorder %s682_s19, %s678_s15 }
 0x17b   : > { %p680_p1 = pnand %p679_p7, %p822_p9 }
 0x17c   : > { %p685_p8 = por %p684_p10, %p683_p4 }
 0x17d   : > { %p681_p2 = pneg %p680_p1 }
 0x17f   : > { %p686_p0 = pnand %p685_p8, %p681_p2 }
 0x181   : > { %689 = shalt.err (!%p686_p0)
}
 0x182   : > { %531 = dma.vmem_to_hbm [thread:$0]  (%p822_p9), %s928_s26, 16, %s402_s7, %s392_s8  }
 0x183 PF: > { %s416_s20 = sand.u32 1, %s728_s9   ;;  %p984_p3 = scmp.ge.s32.totalorder %s748_s14, 2 }
 0x184   : > { %s417_s21 = scalar_lea.sflag [#allocation5], %s416_s20 }
 0x185   : > { %p541_p13 = pnand %p984_p3, %p829_p11 }
 0x187   : > { %p542_p5 = pneg %p541_p13 }
 0x189   : > { %723 = dma.done.wait (%p542_p5), %s417_s21, 16  }
 0x18a   : > { %725 = vsyncadd (%p542_p5), %s417_s21, 4294967280  ;;  %s21_s14 = sadd.s32 1, %s748_s14   ;;  %s985_s9 = smov %s732_s10 }
 0x18b   : > { %p18_p12 = scmp.ge.s32.totalorder %s21_s14, 4   ;;  %s986_s10 = smov %s736_s11 }
 0x18c   : > { %s987_s11 = smov %s827_s23  ;;  %s988_s12 = smov %s744_s13 }
 0x18d   : > { %s989_s13 = smov %s991_s17  ;;  %20 = sbr.rel (!%p18_p12) target bundleno = 8 (0x8), region = 94 }
 0x192   :  { %421 = vsyncpa [#allocation4], 1 }
 0x193   :  { %423 = vsyncpa [#allocation4 + $0x1], 1 }
 0x194   :  { %424 = vsyncpa [#allocation7], 1 }
 0x195   :  { %426 = vsyncpa [#allocation7 + $0x1], 1 }
 0x196   :  { %427 = vsyncpa [#allocation5], 1 }
 0x197   :  { %429 = vsyncpa [#allocation5 + $0x1], 1 }

</bundles_post_ra>
